<compile_context>
chip_gen: v7x
topology: tpu7x:2x2x1
jax: 0.10.0
libtpu: 0.0.40
codegen_flags: <defaults>
</compile_context>

<pallas_src>
import functools

import jax
import jax.numpy as jnp
from jax.experimental import pallas as pl
from jax.experimental.pallas import tpu as pltpu


# ----------------------------------------------------------------------------
# Fused Pallas kernel: conv3d (ring of temporal accumulators) + bias + ReLU
# + global average pool + linear head.
# ----------------------------------------------------------------------------
def fused_video_kernel(a_ref, w_ref, b_ref, hw_ref, hb_ref, o_ref,
                       acc_ref, pool_ref, *, inv_count, c_out_p, tile_s,
                       valid_s):
    si = pl.program_id(1)            # pixel tile
    fi = pl.program_id(2)            # padded frame index (0 .. T+1)
    nsi = pl.num_programs(1)
    nfi = pl.num_programs(2)

    # New batch element: reset the pooled-feature accumulator.
    @pl.when((si == 0) & (fi == 0))
    def _():
        pool_ref[...] = jnp.zeros_like(pool_ref)

    # One fused matmul: all 3 temporal taps consume this frame's activation
    # stream in a single MXU contraction.  W rows are [tap0|tap1|tap2]
    # blocks of c_out_p each.
    a_blk = a_ref[0, 0]                                       # (k_p, tile_s) bf16
    y = jnp.dot(w_ref[...], a_blk,
                preferred_element_type=jnp.float32)           # (3*c_out_p, tile_s)

    # Ring-slot bookkeeping: output time t lives in slot t % 3.
    slot0 = fi % 3          # tap dt=0 -> output t = fi      (overwrite = init)
    slot1 = (fi + 2) % 3    # tap dt=1 -> output t = fi - 1  (accumulate)
    slot2 = (fi + 1) % 3    # tap dt=2 -> output t = fi - 2  (accumulate, completes)

    # Out-of-range contributions (fi near the temporal borders) land in dead
    # slots that are overwritten before ever being finalized, so no masking
    # is needed here.
    acc_ref[slot0] = y[0:c_out_p]
    acc_ref[slot1] += y[c_out_p:2 * c_out_p]
    acc_ref[slot2] += y[2 * c_out_p:3 * c_out_p]

    # Output frame t = fi - 2 is complete: bias + ReLU, fold into global pool.
    @pl.when(fi >= 2)
    def _():
        feat = jnp.maximum(acc_ref[slot2] + b_ref[...], 0.0)  # (c_out_p, tile_s) f32
        if valid_s is not None:
            # Mask zero-padded pixel columns so they don't pollute the pool.
            col = si * tile_s + jax.lax.broadcasted_iota(jnp.int32,
                                                         feat.shape, 1)
            feat = jnp.where(col < valid_s, feat, 0.0)
        pool_ref[...] += jnp.sum(feat, axis=1, keepdims=True)  # (c_out_p, 1)

    # Last step of this batch element: fused head (avg pool scale + Linear).
    @pl.when((si == nsi - 1) & (fi == nfi - 1))
    def _():
        mean = pool_ref[...] * inv_count                              # (c_out_p, 1)
        logits = jnp.sum(mean * hw_ref[...], axis=0, keepdims=True)   # (1, n_cls_p)
        logits = logits + hb_ref[...]
        o_ref[...] = logits.reshape(o_ref.shape).astype(o_ref.dtype)


# ----------------------------------------------------------------------------
# Wrapper: layout prep (cheap XLA ops) + pallas_call
# ----------------------------------------------------------------------------
def _round_up(x, m):
    return ((x + m - 1) // m) * m


def _pick_tile_s(s_pad, max_tile=8192):
    """Largest multiple-of-128 divisor of s_pad that is <= max_tile."""
    if s_pad <= max_tile:
        return s_pad
    cand = (max_tile // 128) * 128
    while cand >= 128:
        if s_pad % cand == 0:
            return cand
        cand -= 128
    return 128      # s_pad is a multiple of 128, so 128 always divides


def base_video_model_forward(x, params):
    """forward(x) = head(backbone(x)) for the canonical BaseVideoModel.

    x: [N, C_in, T, H, W]  (NCTHW, matches PyTorch Conv3d)
    returns logits [N, NUM_CLASSES]
    """
    conv_w, conv_b = params["conv_w"], params["conv_b"]
    head_w, head_b = params["head_w"], params["head_b"]

    n, c_in, t, h, w = x.shape
    assert t >= 1
    c_out = conv_w.shape[0]
    n_cls = head_w.shape[1]
    s = h * w
    k = 9 * c_in                                   # spatial taps x channels

    c_out_p = _round_up(c_out, 16)                 # sublane minimum only
    n_cls_p = _round_up(n_cls, 128)                # lane-dense logits
    k_p = _round_up(k, 32)                         # aligned contraction
    s_pad = _round_up(s, 128)                      # lane-dense pixel dim
    tile_s = _pick_tile_s(s_pad)
    s_tiles = s_pad // tile_s
    valid_s = None if (s_pad == s) else s          # static mask flag

    # ---- host-side layout prep ----------------------------------------------
    # Spatial-only im2col (9x, bf16): A[n, t_pad, k=(ci,dh,dw), p=(h,w)].
    # Single transpose of the small raw input; NO transpose of the expanded
    # tensor (tap axis is stacked adjacent to C, then row-major reshape).
    x_t = jnp.transpose(x, (0, 2, 1, 3, 4))                        # N,T,C,H,W
    x_tp = jnp.pad(x_t, ((0, 0), (1, 1), (0, 0), (1, 1), (1, 1)))  # pad T,H,W
    cols = [x_tp[:, :, :, dh:dh + h, dw:dw + w]
            for dh in range(3) for dw in range(3)]                 # 9x (N,T+2,C,H,W)
    a = jnp.stack(cols, axis=3)                                    # N,T+2,C,9,H,W
    a = a.reshape(n, t + 2, k, s)
    a = jnp.pad(a, ((0, 0), (0, 0), (0, k_p - k), (0, s_pad - s)))
    a = a.astype(jnp.bfloat16)

    # Conv weights: (C_out, C_in, 3,3,3) -> [tap0|tap1|tap2] stacked on the
    # output dim: (3*C_OUT_PAD, K_PAD), K ordered (ci, dh, dw) to match A.
    w_taps = jnp.transpose(conv_w, (2, 0, 1, 3, 4)).reshape(3, c_out, k)
    w_taps = jnp.pad(w_taps, ((0, 0), (0, c_out_p - c_out), (0, k_p - k)))
    w_all = w_taps.reshape(3 * c_out_p, k_p).astype(jnp.bfloat16)

    b_col = jnp.pad(conv_b, (0, c_out_p - c_out)).reshape(c_out_p, 1)
    hw = jnp.pad(head_w, ((0, c_out_p - c_out), (0, n_cls_p - n_cls)))
    hb = jnp.pad(head_b, (0, n_cls_p - n_cls)).reshape(1, n_cls_p)

    kernel = functools.partial(fused_video_kernel,
                               inv_count=1.0 / float(t * s),
                               c_out_p=c_out_p, tile_s=tile_s, valid_s=valid_s)

    out = pl.pallas_call(
        kernel,
        out_shape=jax.ShapeDtypeStruct((n, 1, n_cls_p), jnp.float32),
        grid=(n, s_tiles, t + 2),
        in_specs=[
            # Activations: one padded frame, one pixel tile (each read ONCE).
            pl.BlockSpec((1, 1, k_p, tile_s),
                         lambda ni, si, fi: (ni, fi, 0, si)),
            # Packed conv weights (all 3 taps): resident in VMEM.
            pl.BlockSpec((3 * c_out_p, k_p), lambda ni, si, fi: (0, 0)),
            # Conv bias (column), head weights, head bias: resident.
            pl.BlockSpec((c_out_p, 1), lambda ni, si, fi: (0, 0)),
            pl.BlockSpec((c_out_p, n_cls_p), lambda ni, si, fi: (0, 0)),
            pl.BlockSpec((1, n_cls_p), lambda ni, si, fi: (0, 0)),
        ],
        out_specs=pl.BlockSpec((1, 1, n_cls_p),
                               lambda ni, si, fi: (ni, 0, 0)),
        scratch_shapes=[
            pltpu.VMEM((3, c_out_p, tile_s), jnp.float32),   # accumulator ring
            pltpu.VMEM((c_out_p, 1), jnp.float32),           # pooled features
        ],
        compiler_params=pltpu.CompilerParams(
            dimension_semantics=("parallel", "arbitrary", "arbitrary"),
            vmem_limit_bytes=32 * 1024 * 1024),
    )(a, w_all, b_col, hw, hb)

    return out[:, 0, :n_cls]


# ----------------------------------------------------------------------------
# Pure-JAX reference (for correctness check) + deterministic init
# ----------------------------------------------------------------------------
def reference_forward(x, params):
    out = jax.lax.conv_general_dilated(
        x, params["conv_w"], window_strides=(1, 1, 1),
        padding=((1, 1), (1, 1), (1, 1)),
        dimension_numbers=("NCDHW", "OIDHW", "NCDHW"))
    out = out + params["conv_b"][None, :, None, None, None]
    out = jnp.maximum(out, 0.0)
    feats = out.mean(axis=(2, 3, 4))                               # [N, HIDDEN]
    return feats @ params["head_w"] + params["head_b"]


def init_params(c_in=3, hidden=32, num_classes=8):
    key = jax.random.PRNGKey(0)
    k1, k2, k3, k4 = jax.random.split(key, 4)
    conv_w = 0.05 * jax.random.normal(k1, (hidden, c_in, 3, 3, 3), jnp.float32)
    conv_b = 0.01 * jax.random.normal(k2, (hidden,), jnp.float32)
    head_w = 0.05 * jax.random.normal(k3, (hidden, num_classes), jnp.float32)
    head_b = 0.01 * jax.random.normal(k4, (num_classes,), jnp.float32)
    return {"conv_w": conv_w, "conv_b": conv_b,
            "head_w": head_w, "head_b": head_b}


if __name__ == "__main__":
    # Small video batch: N=2, C=3, T=4, H=W=16  (NCTHW, like PyTorch Conv3d)
    N, C, T, H, W = 2, 3, 4, 16, 16
    HIDDEN, NUM_CLASSES = 32, 8

    key = jax.random.PRNGKey(0)
    x = jax.random.normal(key, (N, C, T, H, W), jnp.float32)
    params = init_params(c_in=C, hidden=HIDDEN, num_classes=NUM_CLASSES)

    logits = base_video_model_forward(x, params)
    jax.block_until_ready(logits)
    assert logits.shape == (N, NUM_CLASSES)

    ref = reference_forward(x, params)
    assert jnp.allclose(logits, ref, rtol=5e-2, atol=5e-2), (
        "Pallas kernel output mismatch vs JAX reference")
    print("KERNEL_OK")
</pallas_src>

<mosaic_0001>
module attributes {stable_mosaic.version = 11 : i64} {
  func.func @fused_video_kernel(%arg0: i32, %arg1: i32, %arg2: i32, %arg3: memref<1x1x32x256xbf16, #tpu.memory_space<vmem>>, %arg4: memref<96x32xbf16, #tpu.memory_space<vmem>>, %arg5: memref<32x1xf32, #tpu.memory_space<vmem>>, %arg6: memref<32x128xf32, #tpu.memory_space<vmem>>, %arg7: memref<1x128xf32, #tpu.memory_space<vmem>>, %arg8: memref<1x1x128xf32, #tpu.memory_space<vmem>>, %arg9: memref<3x32x256xf32, #tpu.memory_space<vmem>>, %arg10: memref<32x1xf32, #tpu.memory_space<vmem>>) attributes {dimension_semantics = [#tpu.dimension_semantics<parallel>, #tpu.dimension_semantics<arbitrary>, #tpu.dimension_semantics<arbitrary>], iteration_bounds = array<i64: 2, 1, 6>, scalar_prefetch = 0 : i64, scratch_operands = 2 : i64, tpu.core_type = #tpu.core_type<tc>, window_params = [{transform_indices = @transform_0, window_bounds = array<i64: 1, 1, 32, 256>}, {pipeline_mode = #tpu.pipeline_mode<synchronous>, transform_indices = @transform_1, window_bounds = array<i64: 96, 32>}, {pipeline_mode = #tpu.pipeline_mode<synchronous>, transform_indices = @transform_2, window_bounds = array<i64: 32, 1>}, {pipeline_mode = #tpu.pipeline_mode<synchronous>, transform_indices = @transform_3, window_bounds = array<i64: 32, 128>}, {pipeline_mode = #tpu.pipeline_mode<synchronous>, transform_indices = @transform_4, window_bounds = array<i64: 1, 128>}, {transform_indices = @transform_5, window_bounds = array<i64: 1, 1, 128>}]} {
    %c0_i32 = arith.constant 0 : i32
    %0 = arith.cmpi eq, %arg1, %c0_i32 : i32
    %c0_i32_0 = arith.constant 0 : i32
    %1 = arith.cmpi eq, %arg2, %c0_i32_0 : i32
    %2 = arith.andi %0, %1 : i1
    %3 = arith.extui %2 : i1 to i32
    %c0_i32_1 = arith.constant 0 : i32
    %4 = arith.cmpi ne, %3, %c0_i32_1 : i32
    scf.if %4 {
      %cst_38 = arith.constant 0.000000e+00 : f32
      %72 = vector.broadcast %cst_38 : f32 to vector<32x1xf32>
      %c0_39 = arith.constant 0 : index
      %c0_40 = arith.constant 0 : index
      %73 = vector.load %arg10[%c0_39, %c0_40] : memref<32x1xf32, #tpu.memory_space<vmem>>, vector<32x1xf32>
      tpu.vector_store %arg10[%c0_39, %c0_40], %72 {strides = array<i32>} : memref<32x1xf32, #tpu.memory_space<vmem>>, vector<32x1xf32>,
    } else {
    }
    %c0 = arith.constant 0 : index
    %c0_2 = arith.constant 0 : index
    %c0_3 = arith.constant 0 : index
    %c0_4 = arith.constant 0 : index
    %5 = vector.load %arg3[%c0, %c0_2, %c0_3, %c0_4] : memref<1x1x32x256xbf16, #tpu.memory_space<vmem>>, vector<1x1x32x256xbf16>
    %6 = vector.shape_cast %5 : vector<1x1x32x256xbf16> to vector<32x256xbf16>
    %c0_5 = arith.constant 0 : index
    %c0_6 = arith.constant 0 : index
    %7 = vector.load %arg4[%c0_5, %c0_6] : memref<96x32xbf16, #tpu.memory_space<vmem>>, vector<96x32xbf16>
    %cst = arith.constant dense<0.000000e+00> : vector<96x256xf32>
    %8 = tpu.matmul %7, %6, %cst {dimension_numbers = #tpu.dot_dimension_numbers<[1], [0], [0], [1], [0, 0, 1, 1], [], []>} : vector<96x32xbf16>, vector<32x256xbf16>, vector<96x256xf32> -> vector<96x256xf32>
    %c3_i32 = arith.constant 3 : i32
    %c0_i32_7 = arith.constant 0 : i32
    %9 = arith.cmpi eq, %c3_i32, %c0_i32_7 : i32
    %c1_i32 = arith.constant 1 : i32
    %10 = arith.select %9, %c1_i32, %c3_i32 : i32
    %11 = arith.remsi %arg2, %10 : i32
    %c0_i32_8 = arith.constant 0 : i32
    %12 = arith.cmpi ne, %11, %c0_i32_8 : i32
    %c0_i32_9 = arith.constant 0 : i32
    %13 = arith.cmpi slt, %11, %c0_i32_9 : i32
    %c0_i32_10 = arith.constant 0 : i32
    %14 = arith.cmpi slt, %10, %c0_i32_10 : i32
    %15 = arith.xori %13, %14 : i1
    %16 = arith.andi %15, %12 : i1
    %17 = arith.addi %11, %10 : i32
    %18 = arith.select %16, %17, %11 : i32
    %c2_i32 = arith.constant 2 : i32
    %19 = arith.addi %arg2, %c2_i32 : i32
    %c3_i32_11 = arith.constant 3 : i32
    %c0_i32_12 = arith.constant 0 : i32
    %20 = arith.cmpi eq, %c3_i32_11, %c0_i32_12 : i32
    %c1_i32_13 = arith.constant 1 : i32
    %21 = arith.select %20, %c1_i32_13, %c3_i32_11 : i32
    %22 = arith.remsi %19, %21 : i32
    %c0_i32_14 = arith.constant 0 : i32
    %23 = arith.cmpi ne, %22, %c0_i32_14 : i32
    %c0_i32_15 = arith.constant 0 : i32
    %24 = arith.cmpi slt, %22, %c0_i32_15 : i32
    %c0_i32_16 = arith.constant 0 : i32
    %25 = arith.cmpi slt, %21, %c0_i32_16 : i32
    %26 = arith.xori %24, %25 : i1
    %27 = arith.andi %26, %23 : i1
    %28 = arith.addi %22, %21 : i32
    %29 = arith.select %27, %28, %22 : i32
    %c1_i32_17 = arith.constant 1 : i32
    %30 = arith.addi %arg2, %c1_i32_17 : i32
    %c3_i32_18 = arith.constant 3 : i32
    %c0_i32_19 = arith.constant 0 : i32
    %31 = arith.cmpi eq, %c3_i32_18, %c0_i32_19 : i32
    %c1_i32_20 = arith.constant 1 : i32
    %32 = arith.select %31, %c1_i32_20, %c3_i32_18 : i32
    %33 = arith.remsi %30, %32 : i32
    %c0_i32_21 = arith.constant 0 : i32
    %34 = arith.cmpi ne, %33, %c0_i32_21 : i32
    %c0_i32_22 = arith.constant 0 : i32
    %35 = arith.cmpi slt, %33, %c0_i32_22 : i32
    %c0_i32_23 = arith.constant 0 : i32
    %36 = arith.cmpi slt, %32, %c0_i32_23 : i32
    %37 = arith.xori %35, %36 : i1
    %38 = arith.andi %37, %34 : i1
    %39 = arith.addi %33, %32 : i32
    %40 = arith.select %38, %39, %33 : i32
    %41 = vector.extract_strided_slice %8 {offsets = [0, 0], sizes = [32, 256], strides = [1, 1]} : vector<96x256xf32> to vector<32x256xf32>
    %42 = arith.index_cast %18 : i32 to index
    %c0_24 = arith.constant 0 : index
    %c0_25 = arith.constant 0 : index
    %43 = vector.load %arg9[%42, %c0_24, %c0_25] : memref<3x32x256xf32, #tpu.memory_space<vmem>>, vector<1x32x256xf32>
    %44 = vector.shape_cast %43 : vector<1x32x256xf32> to vector<32x256xf32>
    %45 = vector.shape_cast %41 : vector<32x256xf32> to vector<1x32x256xf32>
    tpu.vector_store %arg9[%42, %c0_24, %c0_25], %45 {strides = array<i32>} : memref<3x32x256xf32, #tpu.memory_space<vmem>>, vector<1x32x256xf32>,
    %46 = arith.index_cast %29 : i32 to index
    %c0_26 = arith.constant 0 : index
    %c0_27 = arith.constant 0 : index
    %47 = vector.load %arg9[%46, %c0_26, %c0_27] : memref<3x32x256xf32, #tpu.memory_space<vmem>>, vector<1x32x256xf32>
    %48 = vector.shape_cast %47 : vector<1x32x256xf32> to vector<32x256xf32>
    %49 = vector.extract_strided_slice %8 {offsets = [32, 0], sizes = [32, 256], strides = [1, 1]} : vector<96x256xf32> to vector<32x256xf32>
    %50 = arith.addf %48, %49 : vector<32x256xf32>
    %51 = arith.index_cast %29 : i32 to index
    %c0_28 = arith.constant 0 : index
    %c0_29 = arith.constant 0 : index
    %52 = vector.load %arg9[%51, %c0_28, %c0_29] : memref<3x32x256xf32, #tpu.memory_space<vmem>>, vector<1x32x256xf32>
    %53 = vector.shape_cast %52 : vector<1x32x256xf32> to vector<32x256xf32>
    %54 = vector.shape_cast %50 : vector<32x256xf32> to vector<1x32x256xf32>
    tpu.vector_store %arg9[%51, %c0_28, %c0_29], %54 {strides = array<i32>} : memref<3x32x256xf32, #tpu.memory_space<vmem>>, vector<1x32x256xf32>,
    %55 = arith.index_cast %40 : i32 to index
    %c0_30 = arith.constant 0 : index
    %c0_31 = arith.constant 0 : index
    %56 = vector.load %arg9[%55, %c0_30, %c0_31] : memref<3x32x256xf32, #tpu.memory_space<vmem>>, vector<1x32x256xf32>
    %57 = vector.shape_cast %56 : vector<1x32x256xf32> to vector<32x256xf32>
    %58 = vector.extract_strided_slice %8 {offsets = [64, 0], sizes = [32, 256], strides = [1, 1]} : vector<96x256xf32> to vector<32x256xf32>
    %59 = arith.addf %57, %58 : vector<32x256xf32>
    %60 = arith.index_cast %40 : i32 to index
    %c0_32 = arith.constant 0 : index
    %c0_33 = arith.constant 0 : index
    %61 = vector.load %arg9[%60, %c0_32, %c0_33] : memref<3x32x256xf32, #tpu.memory_space<vmem>>, vector<1x32x256xf32>
    %62 = vector.shape_cast %61 : vector<1x32x256xf32> to vector<32x256xf32>
    %63 = vector.shape_cast %59 : vector<32x256xf32> to vector<1x32x256xf32>
    tpu.vector_store %arg9[%60, %c0_32, %c0_33], %63 {strides = array<i32>} : memref<3x32x256xf32, #tpu.memory_space<vmem>>, vector<1x32x256xf32>,
    %c2_i32_34 = arith.constant 2 : i32
    %64 = arith.cmpi sge, %arg2, %c2_i32_34 : i32
    %65 = arith.extui %64 : i1 to i32
    %c0_i32_35 = arith.constant 0 : i32
    %66 = arith.cmpi ne, %65, %c0_i32_35 : i32
    scf.if %66 {
      %72 = arith.index_cast %40 : i32 to index
      %c0_38 = arith.constant 0 : index
      %c0_39 = arith.constant 0 : index
      %73 = vector.load %arg9[%72, %c0_38, %c0_39] : memref<3x32x256xf32, #tpu.memory_space<vmem>>, vector<1x32x256xf32>
      %74 = vector.shape_cast %73 : vector<1x32x256xf32> to vector<32x256xf32>
      %c0_40 = arith.constant 0 : index
      %c0_41 = arith.constant 0 : index
      %75 = vector.load %arg5[%c0_40, %c0_41] : memref<32x1xf32, #tpu.memory_space<vmem>>, vector<32x1xf32>
      %76 = vector.broadcast %75 : vector<32x1xf32> to vector<32x256xf32>
      %77 = arith.addf %74, %76 : vector<32x256xf32>
      %cst_42 = arith.constant 0.000000e+00 : f32
      %78 = vector.broadcast %cst_42 : f32 to vector<32x256xf32>
      %79 = arith.maximumf %77, %78 : vector<32x256xf32>
      %c0_43 = arith.constant 0 : index
      %c0_44 = arith.constant 0 : index
      %80 = vector.load %arg10[%c0_43, %c0_44] : memref<32x1xf32, #tpu.memory_space<vmem>>, vector<32x1xf32>
      %cst_45 = arith.constant dense<0.000000e+00> : vector<32xf32>
      %81 = vector.multi_reduction <add>, %79, %cst_45 [1] : vector<32x256xf32> to vector<32xf32>
      %82 = vector.shape_cast %81 : vector<32xf32> to vector<32x1xf32>
      %83 = arith.addf %80, %82 : vector<32x1xf32>
      %c0_46 = arith.constant 0 : index
      %c0_47 = arith.constant 0 : index
      %84 = vector.load %arg10[%c0_46, %c0_47] : memref<32x1xf32, #tpu.memory_space<vmem>>, vector<32x1xf32>
      tpu.vector_store %arg10[%c0_46, %c0_47], %83 {strides = array<i32>} : memref<32x1xf32, #tpu.memory_space<vmem>>, vector<32x1xf32>,
    } else {
    }
    %c0_i32_36 = arith.constant 0 : i32
    %67 = arith.cmpi eq, %arg1, %c0_i32_36 : i32
    %c5_i32 = arith.constant 5 : i32
    %68 = arith.cmpi eq, %arg2, %c5_i32 : i32
    %69 = arith.andi %67, %68 : i1
    %70 = arith.extui %69 : i1 to i32
    %c0_i32_37 = arith.constant 0 : i32
    %71 = arith.cmpi ne, %70, %c0_i32_37 : i32
    scf.if %71 {
      %c0_38 = arith.constant 0 : index
      %c0_39 = arith.constant 0 : index
      %72 = vector.load %arg10[%c0_38, %c0_39] : memref<32x1xf32, #tpu.memory_space<vmem>>, vector<32x1xf32>
      %cst_40 = arith.constant 9.765625E-4 : f32
      %73 = vector.broadcast %cst_40 : f32 to vector<32x1xf32>
      %74 = arith.mulf %72, %73 : vector<32x1xf32>
      %c0_41 = arith.constant 0 : index
      %c0_42 = arith.constant 0 : index
      %75 = vector.load %arg6[%c0_41, %c0_42] : memref<32x128xf32, #tpu.memory_space<vmem>>, vector<32x128xf32>
      %76 = vector.broadcast %74 : vector<32x1xf32> to vector<32x128xf32>
      %77 = arith.mulf %76, %75 : vector<32x128xf32>
      %cst_43 = arith.constant dense<0.000000e+00> : vector<128xf32>
      %78 = vector.multi_reduction <add>, %77, %cst_43 [0] : vector<32x128xf32> to vector<128xf32>
      %79 = vector.shape_cast %78 : vector<128xf32> to vector<1x128xf32>
      %c0_44 = arith.constant 0 : index
      %c0_45 = arith.constant 0 : index
      %80 = vector.load %arg7[%c0_44, %c0_45] : memref<1x128xf32, #tpu.memory_space<vmem>>, vector<1x128xf32>
      %81 = arith.addf %79, %80 : vector<1x128xf32>
      %82 = vector.shape_cast %81 : vector<1x128xf32> to vector<1x1x128xf32>
      %c0_46 = arith.constant 0 : index
      %c0_47 = arith.constant 0 : index
      %c0_48 = arith.constant 0 : index
      %83 = vector.load %arg8[%c0_46, %c0_47, %c0_48] : memref<1x1x128xf32, #tpu.memory_space<vmem>>, vector<1x1x128xf32>
      tpu.vector_store %arg8[%c0_46, %c0_47, %c0_48], %82 {strides = array<i32>} : memref<1x1x128xf32, #tpu.memory_space<vmem>>, vector<1x1x128xf32>,
    } else {
    }
    return
  }
  func.func @transform_0(%arg0: i32, %arg1: i32, %arg2: i32) -> (i32, i32, i32, i32) {
    %c0_i32 = arith.constant 0 : i32
    %c0_i32_0 = arith.constant 0 : i32
    return %arg0, %arg2, %c0_i32, %arg1 : i32, i32, i32, i32
  }
  func.func @transform_1(%arg0: i32, %arg1: i32, %arg2: i32) -> (i32, i32) {
    %c0_i32 = arith.constant 0 : i32
    %c0_i32_0 = arith.constant 0 : i32
    %c0_i32_1 = arith.constant 0 : i32
    return %c0_i32, %c0_i32_0 : i32, i32
  }
  func.func @transform_2(%arg0: i32, %arg1: i32, %arg2: i32) -> (i32, i32) {
    %c0_i32 = arith.constant 0 : i32
    %c0_i32_0 = arith.constant 0 : i32
    %c0_i32_1 = arith.constant 0 : i32
    return %c0_i32, %c0_i32_0 : i32, i32
  }
  func.func @transform_3(%arg0: i32, %arg1: i32, %arg2: i32) -> (i32, i32) {
    %c0_i32 = arith.constant 0 : i32
    %c0_i32_0 = arith.constant 0 : i32
    %c0_i32_1 = arith.constant 0 : i32
    return %c0_i32, %c0_i32_0 : i32, i32
  }
  func.func @transform_4(%arg0: i32, %arg1: i32, %arg2: i32) -> (i32, i32) {
    %c0_i32 = arith.constant 0 : i32
    %c0_i32_0 = arith.constant 0 : i32
    %c0_i32_1 = arith.constant 0 : i32
    return %c0_i32, %c0_i32_0 : i32, i32
  }
  func.func @transform_5(%arg0: i32, %arg1: i32, %arg2: i32) -> (i32, i32, i32) {
    %c0_i32 = arith.constant 0 : i32
    %c0_i32_0 = arith.constant 0 : i32
    %c0_i32_1 = arith.constant 0 : i32
    return %arg0, %c0_i32, %c0_i32_0 : i32, i32, i32
  }
}

</mosaic_0001>

<bundles_post_ra>
// kernel: tpu_custom_call.1
= control target key start
LH: loop header
LB: loop body
LE: loop exit
PB: predicated region body
PF: predicated region fallthrough
CT: control target
= control target key end

     0   :  { %10 = vsyncpa [#allocation5], 0  ;;  %s1494_s0 = inlined_call_operand.hbm [shape: bf16[2,6,32,256], index: 0, kind: input, shape index: {}]   ;;  %s1495_s1 = inlined_call_operand.vmem [shape: bf16[96,32], index: 1, kind: input, shape index: {}]   ;;  %s1496_s2 = inlined_call_operand.vmem [shape: f32[32,1], index: 2, kind: input, shape index: {}]   ;;  %s1497_s3 = inlined_call_operand.vmem [shape: f32[32,128], index: 3, kind: input, shape index: {}]   ;;  %s1498_s4 = inlined_call_operand.vmem [shape: f32[1,128], index: 4, kind: input, shape index: {}]   ;;  %s1499_s5 = inlined_call_operand.hbm [shape: f32[2,1,128], index: 5, kind: output, shape index: {}]  }
   0x1   :  { %12 = vsyncpa [#allocation5 + $0x1], 0 }
   0x2   :  { %13 = vsyncpa [#allocation6], 0 }
   0x3   :  { %15 = vsyncpa [#allocation6 + $0x1], 0  ;;  %s1179_s18 = smov 0   ;;  %s1181_s19 = smov 0  }
   0x4   :  { %s1183_s20 = smov 0   ;;  %s1185_s21 = smov 0  }
   0x5   :  { %s1187_s22 = smov 0   ;;  %s1189_s23 = smov 0  }
   0x6   :  { %s1191_s24 = smov 0   ;;  %s1193_s25 = smov 0  }
   0x7   :  { %s1195_s26 = smov 0   ;;  %s1197_s27 = smov 0  }
   0x8   :  { %s1199_s28 = smov 0  }
   0x9 LB: > { %1504 = sst [smem:[#allocation10_spill]] %s1119_s23  ;;  %s800_s29 = sadd.s32 4294967295, %s1139_s28   ;;  %s1139_s28 = sphi %s1199_s28, %s21_s28   ;;  %s1135_s27 = sphi %s1197_s27, %s1529_s27   ;;  %s1131_s26 = sphi %s1195_s26, %s1528_s26   ;;  %s1127_s25 = sphi %s1193_s25, %s1527_s25   ;;  %s1123_s24 = sphi %s1191_s24, %s1526_s24   ;;  %s1119_s23 = sphi %s1189_s23, %s1518_s23   ;;  %s1115_s22 = sphi %s1187_s22, %s1525_s22   ;;  %s1111_s21 = sphi %s1185_s21, %s1524_s21   ;;  %s1107_s20 = sphi %s1183_s20, %s1523_s20   ;;  %s1103_s19 = sphi %s1181_s19, %s1522_s19   ;;  %s1099_s18 = sphi %s1179_s18, %s1521_s18  }
   0xa   : > { %s801_s30 = sadd.s32 4294967294, %s1139_s28   ;;  %s33_s6 = sadd.s32 1, %s1131_s26 }
   0xb   : > { %s40_s7 = sadd.s32 1, %s1135_s27  ;;  %p34_p0 = scmp.ge.s32.totalorder %s33_s6, 6 }
   0xc   : > { %s51_s8 = sadd.s32 1, %s1119_s23  ;;  %p58_p1 = scmp.ne.s32.totalorder %s1119_s23, %s1115_s22 }
   0xd   : > { %p59_p2 = scmp.eq.s32.totalorder %s1139_s28, 0  ;;  %s1531_s6 = smov (%p34_p0, %s33_s6), 0 }
   0xe   : > { %1505 = sst [smem:[#allocation11_spill]] %s1531_s6  ;;  %s1533_s7 = smov (!%p34_p0, %s40_s7), %s1135_s27 }
   0xf   : > { %s45_s9 = ssub.s32 %s1131_s26, %s1531_s6  ;;  %p1245_p3 = por %p59_p2, %p58_p1 }
  0x10   : > { %p42_p4 = scmp.ge.s32.totalorder %s1533_s7, 2  ;;  %p64_p5 = scmp.ne.s32.totalorder %s1115_s22, %s1111_s21 }
  0x11   : > { %p65_p6 = scmp.eq.s32.totalorder %s800_s29, 0  ;;  %s161_s11 = sadd.s32 1, %s1107_s20 }
  0x12   : > { %s1535_s7 = smov (%p42_p4, %s1533_s7), 0  ;;  %p171_p8 = scmp.ne.s32.totalorder %s1107_s20, %s1103_s19 }
  0x13   : > { %1507 = sst [smem:[#allocation12_spill]] %s1535_s7  ;;  %p1253_p7 = por %p65_p6, %p64_p5 }
  0x14   : > { %s44_s13 = ssub.s32 %s1135_s27, %s1535_s7  ;;  %p172_p9 = scmp.eq.s32.totalorder %s800_s29, 11 }
  0x15   : > { %s46_s14 = sor.u32 %s45_s9, %s44_s13  ;;  %p159_p10 = scmp.eq.s32.totalorder %s44_s13, 0 }
  0x16   : > { %p49_p11 = scmp.eq.s32.totalorder %s46_s14, 0  ;;  %p1261_p12 = por %p172_p9, %p171_p8 }
  0x17   : > { %s1266_s16 = scalar_select %p159_p10, %s1107_s20, %s161_s11  }
  0x18   : > { %s1509_s15 = scalar_select %p1261_p12, 1, 0 }
  0x19   : > { %1510 = sst [smem:[#allocation13_spill]] %s1266_s16  ;;  %p177_p13 = scmp.ne.s32.totalorder %s1103_s19, %s1099_s18 }
  0x1a   : > { %s1269_s17 = scalar_select %p49_p11, %s1119_s23, %s51_s8  }
  0x1b   : > { %p178_p0 = scmp.eq.s32.totalorder %s801_s30, 11  ;;  %p868_p1 = scmp.lt.s32.totalorder %s1139_s28, 12 }
  0x1c   : > { %1511 = sst [smem:[#allocation14_spill]] %s1269_s17  ;;  %s210_s29 = sand.u32 1, %s1119_s23  }
  0x1d   : > { %p1274_p2 = por %p178_p0, %p177_p13  ;;  %s804_s9 = sshll.u32 %s210_s29, 5 }
  0x1e   : > { %s805_s13 = sshll.u32 %s1131_s26, 3  ;;  %s855_s7 = smul.u32 48, %s1135_s27 }
  0x1f   : > { %s1512_s21 = scalar_select %p1274_p2, 1, 0 }
  0x20   : > { %s214_s14 = scalar_lea.vmem [#allocation4], %s804_s9  ;;  %p1285_p4 = pnand %p868_p1, %p1245_p3 }
  0x21   : > { %s225_s6 = sshll.u32 %s214_s14, 4  ;;  %s222_s30 = sadd.s32 %s855_s7, %s805_s13  ;;  %s1281_s6 = int_to_ptr.vmem [resolvable:$true] %s225_s6 }
  0x22   : > { %s806_s8 = sshll.u32 %s222_s30, 6  ;;  %s1294_s9 = scalar_lea.sflag [#allocation5], %s210_s29 }
  0x23   : > { %s1292_s23 = scalar_lea.hbm %s1494_s0, %s806_s8  ;;  %p989_p5 = pneg %p1285_p4 }
  0x24   : > { %s987_s10 = scalar_lea.hbm %s1292_s23, 512  ;;  %s992_s16 = scalar_lea.hbm %s1494_s0, 6144 }
  0x25   : > { %p988_p3 = scmp.ne.s32.totalorder %s1292_s23, %s987_s10  ;;  %p993_p9 = scmp.lt.u32.totalorder %s1292_s23, %s1494_s0 }
  0x26   : > { %p994_p10 = scmp.lt.u32.totalorder %s992_s16, %s987_s10  ;;  %p996_p13 = scmp.lt.u32.totalorder %s987_s10, %s1292_s23 }
  0x27   : > { %p990_p6 = pnand %p989_p5, %p988_p3 }
  0x28   : > { %p995_p11 = por %p994_p10, %p993_p9 }
  0x29   : > { %p991_p8 = pneg %p990_p6 }
  0x2a   : > { %p997_p0 = por %p996_p13, %p995_p11 }
  0x2c   : > { %p998_p1 = pnand %p997_p0, %p991_p8 }
  0x2e   : > { %1001 = shalt.err (!%p998_p1)
}
  0x2f   : > { %s1002_s29 = scalar_lea.vmem %s1281_s6, 512  ;;  %s1141_s30 = smov [#allocation4]  }
  0x30   : > { %p1003_p3 = scmp.ne.s32.totalorder %s1281_s6, %s1002_s29  ;;  %s1007_s8 = sshll.u32 %s1141_s30, 4  ;;  %s1008_s8 = int_to_ptr.vmem [resolvable:$false] %s1007_s8 }
  0x31   : > { %s1009_s7 = scalar_lea.vmem %s1008_s8, 1024  ;;  %p1010_p12 = scmp.lt.s32.totalorder %s1281_s6, %s1008_s8 }
  0x32   : > { %p1005_p6 = pnand %p1003_p3, %p989_p5  ;;  %p1011_p9 = scmp.lt.s32.totalorder %s1009_s7, %s1002_s29 }
  0x34   : > { %p1006_p2 = pneg %p1005_p6  ;;  %p1012_p10 = por %p1011_p9, %p1010_p12 }
  0x36   : > { %p1013_p11 = pnand %p1012_p10, %p1006_p2 }
  0x38   : > { %1016 = shalt.err (!%p1013_p11)
}
  0x39   : > { %s1142_s10 = smov 128   ;;  %s1143_s13 = smov 8  }
  0x3a   : > { %863 = dma.hbm_to_vmem [thread:$0]  (!%p1285_p4), %s1292_s23, 512, %s1281_s6, %s1294_s9, %s1142_s10, %s1142_s10, %s1143_s13  }
  0x3b   : > { %p807_p5 = scmp.ge.s32.totalorder %s1139_s28, 1  ;;  %p233_p8 = scmp.lt.s32.totalorder %s1139_s28, 13 }
  0x3d   : > { %p234_p13 = pnand %p807_p5, %p233_p8 }
  0x3e   : > { %s239_s16 = sand.u32 (!%p234_p13), 1, %s1115_s22  }
  0x3f   : > { %237 = sbr.rel (%p234_p13) target bundleno = 687 (0x2af), region = 40  ;;  %s808_s17 = sshll.u32 (!%p234_p13), %s239_s16, 5 }
  0x40   : > { %s240_s14 = scalar_lea.sflag (!%p234_p13), [#allocation5], %s239_s16  ;;  %s243_s29 = scalar_lea.vmem (!%p234_p13), [#allocation4], %s808_s17 }
  0x46   : > { %1090 = dma.done.wait (%p1253_p7), %s240_s14, 512  }
  0x47   : > { %1092 = vsyncadd (%p1253_p7), %s240_s14, 4294966784  ;;  %s267_s11 = sand.u32 1, %s1103_s19   ;;  %p272_p12 = scmp.eq.s32.totalorder %s1123_s24, 0 }
  0x48   : > { %s1333_s23 = scalar_lea.vmem [#allocation7], %s267_s11  ;;  %vm277_vm0 = vcmask (%p272_p12), 7168   ;;  %v1144_v0 = vmov (%p272_p12), 0.0  }
  0x49   : > { %276 = sbr.rel (!%p272_p12) target bundleno = 80 (0x50), region = 48  ;;  %278 = vst.msk [vmem:[#allocation3] sm:$0xff] (%p272_p12), %vm277_vm0, %v1144_v0  ;;  %279 = vst.msk [vmem:[#allocation3 + $0x8] sm:$0xff] (%p272_p12), %vm277_vm0, %v1144_v0 }
  0x4a   : > { %280 = vst.msk [vmem:[#allocation3 + $0x10] sm:$0xff] (%p272_p12), %vm277_vm0, %v1144_v0  ;;  %281 = vst.msk [vmem:[#allocation3 + $0x18] sm:$0xff] (%p272_p12), %vm277_vm0, %v1144_v0 }
  0x50 PF: > { %v965_v1 = vld [vmem:[%s243_s29 + $0x4] ss:$8 sps:$4 sm:$0xff]   ;;  %v967_v2 = vld [vmem:[%s243_s29] ss:$8 sps:$4 sm:$0xff]   ;;  %v1145_v3 = vmov 0   ;;  %v972_v7 = vld [vmem:[%s1495_s1 + $0x18] sm:$0xff]  }
  0x51   : > { %399 = vmatprep.mubr.bf16.mxu0 %v1145_v3  ;;  %429 = vmatprep.mubr.bf16.mxu1 %v1145_v3  ;;  %v968_v4 = vld [vmem:[%s243_s29 + $0x14] ss:$8 sps:$4 sm:$0xff]   ;;  %v970_v5 = vld [vmem:[%s243_s29 + $0x10] ss:$8 sps:$4 sm:$0xff]   ;;  %v971_v6 = vld [vmem:[%s1495_s1] sm:$0xff]   ;;  %vm348_vm1 = vcmask 261120  }
  0x52   : > { %367 = vmatprep.subr.bf16.mxu0 %v965_v1  ;;  %851 = vmatprep.subr.bf16.mxu1 %v965_v1  ;;  %v973_v8 = vld [vmem:[%s1495_s1 + $0x8] sm:$0xff]   ;;  %v974_v9 = vld [vmem:[%s1495_s1 + $0x20] sm:$0xff]   ;;  %v975_v10 = vld [vmem:[%s1495_s1 + $0x10] sm:$0xff]   ;;  %s461_s6 = ssub.s32 0, %s1123_s24  ;;  %s1356_s9 = sadd.s32 2, %s1123_s24 }
  0x53   : > { %368 = vmatpush1.bf16.msra.mxu0 %v967_v2  ;;  %853 = vmatpush1.bf16.msra.mxu1 %v967_v2  ;;  %v976_v11 = vld [vmem:[%s1495_s1 + $0x28] sm:$0xff]   ;;  %s826_s12 = smin.u32 %s1123_s24, %s461_s6  ;;  %s475_s30 = ssub.s32 0, %s1356_s9 }
  0x54   : > { %369 = vmatprep.subr.bf16.mxu0 %v968_v4  ;;  %852 = vmatprep.subr.bf16.mxu1 %v968_v4  ;;  %977 = sdivrem.u32 %s826_s12, 3  ;;  %s829_s8 = smin.u32 %s475_s30, %s1356_s9 }
  0x55   : > { %979 = sdivrem.u32 %s829_s8, 3  ;;  %s1361_s7 = sadd.s32 1, %s1123_s24 }
  0x56   : > { %s489_s10 = ssub.s32 0, %s1361_s7  ;;  %p460_p7 = scmp.lt.s32.totalorder %s1123_s24, 0 }
  0x57   : > { %370 = vmatpush1.bf16.msra.mxu0 %v970_v5  ;;  %854 = vmatpush1.bf16.msra.mxu1 %v970_v5  ;;  %s832_s13 = smin.u32 %s489_s10, %s1361_s7  ;;  %p474_p4 = scmp.lt.s32.totalorder %s1356_s9, 0 }
  0x58   : > { %981 = sdivrem.u32 %s832_s13, 3  ;;  %p488_p1 = scmp.lt.s32.totalorder %s1361_s7, 0 }
  0x59   : > { %p841_p6 = scmp.lt.s32.totalorder %s1123_s24, 2 }
  0x5a   : > { %820 = vmatmul.mubr.msk.bf16.vlgmr.msra.gmra.mrb[0].mxu0 %vm348_vm1, %v971_v6  ;;  %823 = vmatmul.mubr.msk.bf16.vlgmr.msra.gmra.mrb[0].mxu1 %vm348_vm1, %v972_v7  ;;  %v580_v4 = vld [vmem:[%s1496_s2 + $0x10] sm:$0xff] (!%p841_p6)  ;;  %v578_v5 = vld [vmem:[%s1496_s2] sm:$0xff] (!%p841_p6)  ;;  %v1146_v6 = vmov (!%p841_p6), 0   ;;  %v581_v7 = vld [vmem:[%s1496_s2 + $0x18] sm:$0xff] (!%p841_p6)  ;;  %vm638_vm2 = vcmask (!%p841_p6), 7168  }
  0x5b   : > { %409 = vmatprep.mubr.bf16.mxu0 %v1145_v3  ;;  %439 = vmatprep.mubr.bf16.mxu1 %v1145_v3 }
  0x5c   : > { %984 = vset.pattern.permute.xlu1 (!%p841_p6), %v1146_v6  ;;  %983 = vset.pattern.permute.xlu0 (!%p841_p6), %v1146_v6 }
  0x5d   : > { %s978_s16 = spop.drf %977  ;;  %594 = vperm.xlu1 (!%p841_p6), %984, %v580_v4   ;;  %584 = vperm.xlu0 (!%p841_p6), %983, %v578_v5  }
  0x5e   : > { %s465_s17 = ssub.s32 0, %s978_s16  ;;  %s980_s6 = spop.drf %979 }
  0x5f   : > { %s1537_s17 = smov (!%p460_p7, %s465_s17), %s978_s16  ;;  %s479_s12 = ssub.s32 0, %s980_s6 }
  0x60   : > { %p828_p2 = scmp.lt.s32.totalorder %s1537_s17, 0  ;;  %s471_s14 = sadd.s32 3, %s1537_s17 }
  0x61   : > { %s1541_s12 = smov (!%p474_p4, %s479_s12), %s980_s6  ;;  %s982_s9 = spop.drf %981  ;;  %599 = vperm.xlu1 (!%p841_p6), %984, %v581_v7  }
  0x62   : > { %821 = vmatmul.mubr.msk.bf16.gmra.mrb[4].mxu0 %vm348_vm1, %v973_v8  ;;  %824 = vmatmul.mubr.msk.bf16.gmra.mrb[4].mxu1 %vm348_vm1, %v974_v9  ;;  %s1539_s14 = smov (!%p828_p2, %s471_s14), %s1537_s17  ;;  %p831_p0 = scmp.lt.s32.totalorder %s1541_s12, 0  ;;  %v579_v8 = vld [vmem:[%s1496_s2 + $0x8] sm:$0xff] (!%p841_p6) }
  0x63   : > { %419 = vmatprep.mubr.bf16.mxu0 %v1145_v3  ;;  %449 = vmatprep.mubr.bf16.mxu1 %v1145_v3  ;;  %s847_s29 = sshll.u32 %s1539_s14, 6  ;;  %s485_s8 = sadd.s32 3, %s1541_s12 }
  0x64   : > { %s503_s30 = scalar_lea.vmem [#allocation2], %s847_s29  ;;  %s1543_s8 = smov (!%p831_p0, %s485_s8), %s1541_s12  ;;  %589 = vperm.xlu0 (!%p841_p6), %983, %v579_v8  }
  0x65   : > { %s493_s10 = ssub.s32 0, %s982_s9  ;;  %s848_s13 = sshll.u32 %s1543_s8, 6 }
  0x66   : > { %s1545_s10 = smov (!%p488_p1, %s493_s10), %s982_s9  ;;  %s514_s16 = scalar_lea.vmem [#allocation2], %s848_s13 }
  0x67   : > { %p834_p3 = scmp.lt.s32.totalorder %s1545_s10, 0  ;;  %s499_s7 = sadd.s32 3, %s1545_s10 }
  0x69   : > { %s1547_s7 = smov (!%p834_p3, %s499_s7), %s1545_s10 }
  0x6a   : > { %822 = vmatmul.mubr.msk.bf16.gmra.mrb[8].mxu0 %vm348_vm1, %v975_v10  ;;  %825 = vmatmul.mubr.msk.bf16.gmra.mrb[8].mxu1 %vm348_vm1, %v976_v11  ;;  %s849_s17 = sshll.u32 %s1547_s7, 6 }
  0x6b   : > { %s1375_s14 = scalar_lea.vmem [#allocation2], %s849_s17 }
 0x12d   : > { %v401_v12 = vpop.f32.mrb[0].mxu0  ;;  %v431_v13 = vpop.f32.mrb[0].mxu1 }
 0x12e   : > { %504 = vst [vmem:[%s503_s30] sm:$0xff] %v401_v12  ;;  %v403_v14 = vpop.f32.mrb[1].mxu0  ;;  %v433_v15 = vpop.f32.mrb[1].mxu1 }
 0x12f   : > { %505 = vst [vmem:[%s503_s30 + $0x8] sm:$0xff] %v403_v14  ;;  %v405_v16 = vpop.f32.mrb[2].mxu0  ;;  %v435_v17 = vpop.f32.mrb[2].mxu1 }
 0x130   : > { %506 = vst [vmem:[%s503_s30 + $0x10] sm:$0xff] %v405_v16  ;;  %v407_v18 = vpop.f32.mrb[3].mxu0  ;;  %v437_v19 = vpop.f32.mrb[3].mxu1 }
 0x131   : > { %507 = vst [vmem:[%s503_s30 + $0x18] sm:$0xff] %v407_v18  ;;  %v585_v14 = vpop.permute.xlu0 (!%p841_p6), %584 }
 0x135   : > { %v411_v20 = vpop.f32.mrb[4].mxu0  ;;  %v441_v21 = vpop.f32.mrb[4].mxu1 }
 0x136   : > { %508 = vst [vmem:[%s503_s30 + $0x20] sm:$0xff] %v411_v20  ;;  %v413_v22 = vpop.f32.mrb[5].mxu0  ;;  %v443_v23 = vpop.f32.mrb[5].mxu1 }
 0x137   : > { %509 = vst [vmem:[%s503_s30 + $0x28] sm:$0xff] %v413_v22  ;;  %v415_v24 = vpop.f32.mrb[6].mxu0  ;;  %v445_v25 = vpop.f32.mrb[6].mxu1 }
 0x138   : > { %510 = vst [vmem:[%s503_s30 + $0x30] sm:$0xff] %v415_v24  ;;  %v417_v26 = vpop.f32.mrb[7].mxu0  ;;  %v447_v27 = vpop.f32.mrb[7].mxu1 }
 0x139   : > { %511 = vst [vmem:[%s503_s30 + $0x38] sm:$0xff] %v417_v26 }
 0x13d   : > { %v421_v28 = vpop.f32.mrb[8].mxu0  ;;  %v451_v29 = vpop.f32.mrb[8].mxu1 }
 0x13e   : > { %v423_v30 = vpop.f32.mrb[9].mxu0  ;;  %v453_v31 = vpop.f32.mrb[9].mxu1 }
 0x13f   : > { %v425_v32 = vpop.f32.mrb[10].mxu0  ;;  %v455_v33 = vpop.f32.mrb[10].mxu1 }
 0x140   : > { %v519_v34 = vld [vmem:[%s514_s16 + $0x20] sm:$0xff]  ;;  %v520_v35 = vld [vmem:[%s514_s16 + $0x28] sm:$0xff]  ;;  %v521_v36 = vld [vmem:[%s514_s16 + $0x30] sm:$0xff]  ;;  %v427_v37 = vpop.f32.mrb[11].mxu0  ;;  %v457_v38 = vpop.f32.mrb[11].mxu1 }
 0x141   : > { %v522_v39 = vld [vmem:[%s514_s16 + $0x38] sm:$0xff]  ;;  %v527_v40 = vadd.f32 %v519_v34, %v431_v13  ;;  %v528_v41 = vadd.f32 %v520_v35, %v433_v15  ;;  %v529_v42 = vadd.f32 %v521_v36, %v435_v17  ;;  %v515_v43 = vld [vmem:[%s514_s16] sm:$0xff]  ;;  %v516_v44 = vld [vmem:[%s514_s16 + $0x8] sm:$0xff]  ;;  %v595_v13 = vpop.permute.xlu1 (!%p841_p6), %594 }
 0x142   : > { %v530_v45 = vadd.f32 %v522_v39, %v437_v19  ;;  %v523_v46 = vadd.f32 %v515_v43, %v421_v28  ;;  %v524_v47 = vadd.f32 %v516_v44, %v423_v30  ;;  %v517_v48 = vld [vmem:[%s514_s16 + $0x10] sm:$0xff]  ;;  %v518_v49 = vld [vmem:[%s514_s16 + $0x18] sm:$0xff]  ;;  %v590_v28 = vpop.permute.xlu0 (!%p841_p6), %589  ;;  %v619_v44 = vld [vmem:[#allocation3 + $0x8] sm:$0xff] (!%p841_p6) }
 0x143   : > { %535 = vst [vmem:[%s514_s16 + $0x20] sm:$0xff] %v527_v40  ;;  %536 = vst [vmem:[%s514_s16 + $0x28] sm:$0xff] %v528_v41  ;;  %v525_v50 = vadd.f32 %v517_v48, %v425_v32  ;;  %v526_v51 = vadd.f32 %v518_v49, %v427_v37  ;;  %v618_v41 = vld [vmem:[#allocation3] sm:$0xff] (!%p841_p6) }
 0x144   : > { %537 = vst [vmem:[%s514_s16 + $0x30] sm:$0xff] %v529_v42  ;;  %538 = vst [vmem:[%s514_s16 + $0x38] sm:$0xff] %v530_v45  ;;  %v620_v45 = vld [vmem:[#allocation3 + $0x10] sm:$0xff] (!%p841_p6) }
 0x145   : > { %531 = vst [vmem:[%s514_s16] sm:$0xff] %v523_v46  ;;  %532 = vst [vmem:[%s514_s16 + $0x8] sm:$0xff] %v524_v47 }
 0x146   : > { %533 = vst [vmem:[%s514_s16 + $0x10] sm:$0xff] %v525_v50  ;;  %534 = vst [vmem:[%s514_s16 + $0x18] sm:$0xff] %v526_v51  ;;  %v621_v50 = vld [vmem:[#allocation3 + $0x18] sm:$0xff] (!%p841_p6) }
 0x14d   : > { %v542_v52 = vld [vmem:[%s1375_s14] sm:$0xff]  ;;  %v543_v53 = vld [vmem:[%s1375_s14 + $0x8] sm:$0xff]  ;;  %v544_v54 = vld [vmem:[%s1375_s14 + $0x10] sm:$0xff]  ;;  %569 = sbr.rel (%p841_p6) target bundleno = 503 (0x1f7), region = 52 }
 0x14e   : > { %v545_v55 = vld [vmem:[%s1375_s14 + $0x18] sm:$0xff]  ;;  %v546_v56 = vld [vmem:[%s1375_s14 + $0x20] sm:$0xff]  ;;  %v550_v57 = vadd.f32 %v542_v52, %v441_v21  ;;  %v551_v58 = vadd.f32 %v543_v53, %v443_v23  ;;  %v552_v59 = vadd.f32 %v544_v54, %v445_v25  ;;  %v547_v60 = vld [vmem:[%s1375_s14 + $0x28] sm:$0xff] }
 0x14f   : > { %v553_v61 = vadd.f32 %v545_v55, %v447_v27  ;;  %v554_v62 = vadd.f32 %v546_v56, %v451_v29  ;;  %v555_v63 = vadd.f32 %v547_v60, %v453_v31  ;;  %v548_v0 = vld [vmem:[%s1375_s14 + $0x30] sm:$0xff]  ;;  %v549_v1 = vld [vmem:[%s1375_s14 + $0x38] sm:$0xff]  ;;  %v600_v27 = vpop.permute.xlu1 (!%p841_p6), %599 }
 0x150   : > { %558 = vst [vmem:[%s1375_s14] sm:$0xff] %v550_v57  ;;  %559 = vst [vmem:[%s1375_s14 + $0x8] sm:$0xff] %v551_v58  ;;  %v556_v2 = vadd.f32 %v548_v0, %v455_v33  ;;  %v557_v3 = vadd.f32 %v549_v1, %v457_v38 }
 0x151   : > { %560 = vst [vmem:[%s1375_s14 + $0x10] sm:$0xff] %v552_v59  ;;  %561 = vst [vmem:[%s1375_s14 + $0x18] sm:$0xff] %v553_v61 }
 0x152   : > { %562 = vst [vmem:[%s1375_s14 + $0x20] sm:$0xff] %v554_v62  ;;  %563 = vst [vmem:[%s1375_s14 + $0x28] sm:$0xff] %v555_v63 }
 0x153   : > { %564 = vst [vmem:[%s1375_s14 + $0x30] sm:$0xff] %v556_v2  ;;  %565 = vst [vmem:[%s1375_s14 + $0x38] sm:$0xff] %v557_v3 }
 0x157   : > { %v570_v11 = vld [vmem:[%s1375_s14] sm:$0xff]  ;;  %v571_v12 = vld [vmem:[%s1375_s14 + $0x8] sm:$0xff] }
 0x158   : > { %v602_v17 = vadd.f32 %v585_v14, %v570_v11  ;;  %v603_v18 = vadd.f32 %v585_v14, %v571_v12  ;;  %v572_v19 = vld [vmem:[%s1375_s14 + $0x10] sm:$0xff]  ;;  %v573_v20 = vld [vmem:[%s1375_s14 + $0x18] sm:$0xff] }
 0x159   : > { %v574_v9 = vld [vmem:[%s1375_s14 + $0x20] sm:$0xff]  ;;  %v575_v10 = vld [vmem:[%s1375_s14 + $0x28] sm:$0xff]  ;;  %v604_v29 = vadd.f32 %v590_v28, %v572_v19  ;;  %v605_v30 = vadd.f32 %v590_v28, %v573_v20 }
 0x15a   : > { %v606_v15 = vadd.f32 %v595_v13, %v574_v9  ;;  %v607_v16 = vadd.f32 %v595_v13, %v575_v10  ;;  %v610_v21 = vmax.f32 %v602_v17, 0.0  ;;  %v611_v22 = vmax.f32 %v603_v18, 0.0  ;;  %v576_v23 = vld [vmem:[%s1375_s14 + $0x30] sm:$0xff]  ;;  %v577_v24 = vld [vmem:[%s1375_s14 + $0x38] sm:$0xff] }
 0x15b   : > { %v608_v31 = vadd.f32 %v600_v27, %v576_v23  ;;  %v609_v32 = vadd.f32 %v600_v27, %v577_v24  ;;  %v612_v34 = vmax.f32 %v604_v29, 0.0  ;;  %v613_v35 = vmax.f32 %v605_v30, 0.0 }
 0x15c   : > { %v614_v25 = vmax.f32 %v606_v15, 0.0  ;;  %v615_v26 = vmax.f32 %v607_v16, 0.0  ;;  %v622_v33 = vadd.f32 %v611_v22, %v610_v21 }
 0x15d   : > { %v625_v37 = vadd.f32 %v613_v35, %v612_v34  ;;  %v616_v38 = vmax.f32 %v608_v31, 0.0  ;;  %v617_v39 = vmax.f32 %v609_v32, 0.0 }
 0x15e   : > { %623 = vadd.xlane.f32.xlu0 %v622_v33  ;;  %v628_v36 = vadd.f32 %v615_v26, %v614_v25 }
 0x15f   : > { %626 = vadd.xlane.f32.xlu1 %v625_v37  ;;  %v631_v40 = vadd.f32 %v617_v39, %v616_v38 }
 0x162   : > { %629 = vadd.xlane.f32.xlu0 %v628_v36 }
 0x166   : > { %632 = vadd.xlane.f32.xlu0 %v631_v40 }
 0x1eb   : > { %v624_v42 = vpop.xlane.xlu0 %623 }
 0x1ec   : > { %v634_v43 = vadd.f32 %v624_v42, %v618_v41  ;;  %v627_v46 = vpop.xlane.xlu1 %626 }
 0x1ed   : > { %v635_v47 = vadd.f32 %v627_v46, %v619_v44 }
 0x1ee   : > { %639 = vst.msk [vmem:[#allocation3] sm:$0xff] %vm638_vm2, %v634_v43 }
 0x1ef   : > { %v630_v48 = vpop.xlane.xlu0 %629  ;;  %640 = vst.msk [vmem:[#allocation3 + $0x8] sm:$0xff] %vm638_vm2, %v635_v47 }
 0x1f0   : > { %v636_v49 = vadd.f32 %v630_v48, %v620_v45 }
 0x1f2   : > { %641 = vst.msk [vmem:[#allocation3 + $0x10] sm:$0xff] %vm638_vm2, %v636_v49 }
 0x1f3   : > { %v633_v51 = vpop.xlane.xlu0 %632 }
 0x1f4   : > { %v637_v52 = vadd.f32 %v633_v51, %v621_v50 }
 0x1f6   : > { %642 = vst.msk [vmem:[#allocation3 + $0x18] sm:$0xff] %vm638_vm2, %v637_v52 }
 0x1f7 PF: > { %p643_p9 = scmp.eq.s32.totalorder %s1123_s24, 5 }
 0x1f8   : > { %v648_v54 = vld [vmem:[#allocation3] sm:$0xff] (%p643_p9)  ;;  %v1147_v56 = vmov (%p643_p9), 0   ;;  %v649_v59 = vld [vmem:[#allocation3 + $0x8] sm:$0xff] (%p643_p9)  ;;  %v658_v2 = vld [vmem:[%s1497_s3 + $0x10] sm:$0xff] (%p643_p9) }
 0x1f9   : > { %647 = sbr.rel (!%p643_p9) target bundleno = 662 (0x296), region = 56  ;;  %v650_v53 = vld [vmem:[#allocation3 + $0x10] sm:$0xff] (%p643_p9)  ;;  %986 = vset.pattern.permute.xlu1 (%p643_p9), %v1147_v56  ;;  %985 = vset.pattern.permute.xlu0 (%p643_p9), %v1147_v56  ;;  %v652_v58 = vmul.f32 (%p643_p9), 0.0009765625, %v648_v54  ;;  %v653_v61 = vmul.f32 (%p643_p9), 0.0009765625, %v649_v59  ;;  %v656_v0 = vld [vmem:[%s1497_s3] sm:$0xff] (%p643_p9)  ;;  %v657_v1 = vld [vmem:[%s1497_s3 + $0x8] sm:$0xff] (%p643_p9) }
 0x1fa   : > { %v654_v57 = vmul.f32 (%p643_p9), 0.0009765625, %v650_v53  ;;  %v659_v6 = vld [vmem:[%s1497_s3 + $0x18] sm:$0xff] (%p643_p9)  ;;  %v693_v18 = vld [vmem:[%s1498_s4] sm:$0x1] (%p643_p9) }
 0x1fb   : > { %662 = vperm.xlu0 (%p643_p9), %985, %v652_v58  }
 0x1fc   : > { %672 = vperm.xlu1 (%p643_p9), %986, %v654_v57  }
 0x1fd   : > { %v651_v55 = vld [vmem:[#allocation3 + $0x18] sm:$0xff] (%p643_p9) }
 0x1fe   : > { %v655_v60 = vmul.f32 (%p643_p9), 0.0009765625, %v651_v55 }
 0x1ff   : > { %667 = vperm.xlu0 (%p643_p9), %985, %v653_v61  }
 0x200   : > { %677 = vperm.xlu1 %986, %v655_v60  }
 0x27a   : > { %v663_v63 = vpop.permute.xlu0 %662 }
 0x27b   : > { %v673_v62 = vpop.permute.xlu1 %672  ;;  %v680_v4 = vmul.f32 %v663_v63, %v656_v0 }
 0x27c   : > { %v682_v8 = vmul.f32 %v673_v62, %v658_v2 }
 0x27e   : > { %v668_v3 = vpop.permute.xlu0 %667 }
 0x27f   : > { %v681_v5 = vmul.f32 %v668_v3, %v657_v1  ;;  %v678_v7 = vpop.permute.xlu1 %677 }
 0x280   : > { %v683_v10 = vmul.f32 %v678_v7, %v659_v6 }
 0x281   : > { %v684_v9 = vadd.f32 %v681_v5, %v680_v4 }
 0x283   : > { %v685_v11 = vadd.f32 %v684_v9, %v682_v8 }
 0x285   : > { %v686_v12 = vadd.f32 %v685_v11, %v683_v10 }
 0x287   : > { %v687_v13 = vrot.slane %v686_v12, 4 }
 0x289   : > { %v688_v14 = vadd.f32 %v687_v13, %v686_v12 }
 0x28b   : > { %v689_v15 = vrot.slane %v688_v14, 2 }
 0x28d   : > { %v690_v16 = vadd.f32 %v689_v15, %v688_v14 }
 0x28f   : > { %v691_v17 = vrot.slane %v690_v16, 1 }
 0x291   : > { %v692_v19 = vadd.f32 %v691_v17, %v690_v16 }
 0x293   : > { %v694_v20 = vadd.f32 %v693_v18, %v692_v19 }
 0x295   : > { %695 = vst [vmem:[%s1333_s23] sm:$0x1] %v694_v20 }
 0x296 PF: > { %s843_s9 = sshll.u32 %s1127_s25, 4  ;;  %s709_s24 = sshll.u32 %s1333_s23, 4  ;;  %s710_s24 = int_to_ptr.vmem [resolvable:$true] %s709_s24 }
 0x297   : > { %s1435_s16 = scalar_lea.hbm %s1499_s5, %s843_s9  ;;  %s697_s7 = scalar_lea.sflag [#allocation6], %s267_s11 }
 0x298   : > { %s1017_s17 = scalar_lea.vmem %s710_s24, 16  ;;  %p1514_p11 = scmp.ne.s32.totalorder %s1509_s15, 0 }
 0x299   : > { %p1018_p10 = scmp.ne.s32.totalorder %s710_s24, %s1017_s17  ;;  %s1148_s14 = smov [#allocation7]  }
 0x29a   : > { %s1021_s29 = sshll.u32 %s1148_s14, 4  ;;  %s1022_s29 = int_to_ptr.vmem [resolvable:$false] %s1021_s29 }
 0x29b   : > { %p1019_p5 = pnand %p1018_p10, %p1514_p11  ;;  %s1023_s6 = scalar_lea.vmem %s1022_s29, 32 }
 0x29c   : > { %p1024_p13 = scmp.lt.s32.totalorder %s710_s24, %s1022_s29  ;;  %p1025_p12 = scmp.lt.s32.totalorder %s1023_s6, %s1017_s17 }
 0x29d   : > { %p1020_p8 = pneg %p1019_p5 }
 0x29e   : > { %p1026_p7 = por %p1025_p12, %p1024_p13 }
 0x2a0   : > { %p1027_p2 = pnand %p1026_p7, %p1020_p8 }
 0x2a2   : > { %1030 = shalt.err (!%p1027_p2)
}
 0x2a3   : > { %s1031_s25 = scalar_lea.hbm %s1435_s16, 16  ;;  %s1035_s12 = scalar_lea.hbm %s1499_s5, 32 }
 0x2a4   : > { %p1032_p4 = scmp.ne.s32.totalorder %s1435_s16, %s1031_s25  ;;  %p1036_p3 = scmp.lt.u32.totalorder %s1435_s16, %s1499_s5 }
 0x2a5   : > { %p1037_p6 = scmp.lt.u32.totalorder %s1035_s12, %s1031_s25  ;;  %p1039_p10 = scmp.lt.u32.totalorder %s1031_s25, %s1435_s16 }
 0x2a6   : > { %p1033_p0 = pnand %p1032_p4, %p1514_p11 }
 0x2a7   : > { %p1038_p9 = por %p1037_p6, %p1036_p3 }
 0x2a8   : > { %p1034_p1 = pneg %p1033_p0 }
 0x2a9   : > { %p1040_p5 = por %p1039_p10, %p1038_p9 }
 0x2ab   : > { %p1041_p8 = pnand %p1040_p5, %p1034_p1 }
 0x2ad   : > { %1044 = shalt.err (!%p1041_p8)
}
 0x2ae   : > { %858 = dma.vmem_to_hbm [thread:$0]  (%p1514_p11), %s710_s24, 16, %s1435_s16, %s697_s7  }
 0x2af PF: > { %p869_p13 = scmp.ge.s32.totalorder %s1139_s28, 2  ;;  %s721_s9 = sand.u32 1, %s1099_s18  }
 0x2b0   : > { %p1515_p12 = scmp.ne.s32.totalorder %s1512_s21, 0  ;;  %s722_s10 = scalar_lea.sflag [#allocation6], %s721_s9 }
 0x2b2   : > { %p865_p7 = pnand %p869_p13, %p1515_p12 }
 0x2b4   : > { %1094 = dma.done.wait (!%p865_p7), %s722_s10, 16  }
 0x2b5   : > { %1096 = vsyncadd (!%p865_p7), %s722_s10, 4294967280  ;;  %s21_s28 = sadd.s32 1, %s1139_s28   ;;  %s1516_s13 = sld [smem:[#allocation13_spill]] }
 0x2b6   : > { %p18_p2 = scmp.ge.s32.totalorder %s21_s28, 14   ;;  %s1517_s15 = sld [smem:[#allocation10_spill]] }
 0x2b7   : > { %s1518_s23 = sld [smem:[#allocation14_spill]]  ;;  %s1519_s16 = sld [smem:[#allocation11_spill]] }
 0x2b8   : > { %s1520_s7 = sld [smem:[#allocation12_spill]]  ;;  %s1521_s18 = smov %s1103_s19 }
 0x2b9   : > { %s1522_s19 = smov %s1107_s20  ;;  %s1524_s21 = smov %s1115_s22 }
 0x2ba   : > { %s1526_s24 = smov %s1131_s26  ;;  %s1527_s25 = smov %s1135_s27 }
 0x2bb   : > { %s1523_s20 = smov %s1516_s13  ;;  %20 = sbr.rel (!%p18_p2) target bundleno = 9 (0x9), region = 100 }
 0x2bc   : > { %s1525_s22 = smov %s1517_s15 }
 0x2bd   : > { %s1528_s26 = smov %s1519_s16 }
 0x2be   : > { %s1529_s27 = smov %s1520_s7 }
 0x2c2   :  { %726 = vsyncpa [#allocation5], 1 }
 0x2c3   :  { %728 = vsyncpa [#allocation5 + $0x1], 1 }
 0x2c4   :  { %729 = vsyncpa [#allocation6], 1 }
 0x2c5   :  { %731 = vsyncpa [#allocation6 + $0x1], 1 }

</bundles_post_ra>
